<compile_context>
chip_gen: v5e
topology: v5e:2x2
jax: 0.10.0
libtpu: 0.0.40
codegen_flags: <defaults>
</compile_context>

<pallas_src>
import math

import jax
import jax.numpy as jnp
from jax.experimental import pallas as pl
from jax.experimental.pallas import tpu as pltpu

HIDDEN_DIM = 64
INPUT_DIM = 7

SUBLANE = 8


def _round_up(n, m):
    return ((n + m - 1) // m) * m


def _num_tensorcores():
    """Best-effort per-chip TensorCore count (v7x has 2, earlier gens 1)."""
    try:
        kind = jax.devices()[0].device_kind.lower()
    except Exception:
        return 1
    return 2 if ("v7" in kind or "tpu7" in kind) else 1


def mlp_kernel(x_ref, w1_ref, b1_ref, w2_ref, b2_ref, o_ref):
    # Layer 1: (bt, D_in) @ (D_in, H) on the MXU, f32 accumulation.
    h = jnp.dot(x_ref[...], w1_ref[...], preferred_element_type=jnp.float32)
    h = jnp.maximum(h + b1_ref[...], 0.0)          # bias + ReLU in f32 (VPU)
    # Layer 2: (bt, H) @ (H, H); cast is a no-op when compute dtype is f32.
    o = jnp.dot(h.astype(w2_ref.dtype), w2_ref[...],
                preferred_element_type=jnp.float32)
    o_ref[...] = jnp.maximum(o + b2_ref[...], 0.0).astype(o_ref.dtype)


def prepare_mlp_params(w1, b1, w2, b2, compute_dtype=jnp.float32):
    """One-time parameter prep (cast + bias reshape), hoisted off the hot path.

    Weights stored as (in, out) so the kernel computes x @ W directly
    (equivalent to PyTorch's x @ W_pt.T).
    """
    H1 = w1.shape[1]
    H2 = w2.shape[1]
    assert w2.shape[0] == H1 and b1.shape == (H1,) and b2.shape == (H2,)
    w1c = w1.astype(compute_dtype)
    w2c = w2.astype(compute_dtype)
    b1r = b1.astype(jnp.float32).reshape(1, H1)    # bias add stays in f32
    b2r = b2.astype(jnp.float32).reshape(1, H2)
    return (w1c, b1r, w2c, b2r)


def mlp_forward(x, params, *, batch_tile=1024, out_dtype=jnp.float32):
    """y = relu(relu(x @ w1 + b1) @ w2 + b2) with prepared params."""
    w1c, b1r, w2c, b2r = params
    B, D_in = x.shape
    assert w1c.shape[0] == D_in
    H1 = w1c.shape[1]
    H2 = w2c.shape[1]
    compute_dtype = w1c.dtype

    # ---- Batch tiling: big tiles amortize ~0.35us/step grid overhead.  Only
    # on 2-TC chips (v7x) force >= 2 grid steps so both cores get work.
    bt = min(_round_up(batch_tile, SUBLANE), _round_up(B, SUBLANE))
    if _num_tensorcores() >= 2 and pl.cdiv(B, bt) < 2 and bt >= 2 * SUBLANE:
        bt = _round_up(bt // 2, SUBLANE)
    Bp = _round_up(B, bt)
    grid = Bp // bt

    # ---- Cheap x staging: single cast, then a single row pad only if ragged.
    xs = x if x.dtype == compute_dtype else x.astype(compute_dtype)
    if Bp != B:
        xs = jnp.pad(xs, ((0, Bp - B), (0, 0)))

    out_itemsize = jax.dtypes.canonicalize_dtype(out_dtype).itemsize
    flops = 2 * Bp * (D_in * H1 + H1 * H2)
    bytes_accessed = (
        int(xs.size) * xs.dtype.itemsize
        + sum(int(a.size) * a.dtype.itemsize for a in (w1c, b1r, w2c, b2r))
        + Bp * H2 * out_itemsize)
    cost = pl.CostEstimate(flops=flops, transcendentals=0,
                           bytes_accessed=bytes_accessed)

    out = pl.pallas_call(
        mlp_kernel,
        out_shape=jax.ShapeDtypeStruct((Bp, H2), out_dtype),
        grid_spec=pltpu.PrefetchScalarGridSpec(
            num_scalar_prefetch=0,
            grid=(grid,),
            in_specs=[
                pl.BlockSpec((bt, D_in), lambda i: (i, 0)),   # x batch tile
                pl.BlockSpec((D_in, H1), lambda i: (0, 0)),   # w1 (resident)
                pl.BlockSpec((1, H1), lambda i: (0, 0)),      # b1 (resident)
                pl.BlockSpec((H1, H2), lambda i: (0, 0)),     # w2 (resident)
                pl.BlockSpec((1, H2), lambda i: (0, 0)),      # b2 (resident)
            ],
            out_specs=pl.BlockSpec((bt, H2), lambda i: (i, 0)),
        ),
        compiler_params=pltpu.CompilerParams(
            dimension_semantics=("parallel",),
        ),
        cost_estimate=cost,
    )(xs, w1c, b1r, w2c, b2r)

    return out[:B] if Bp != B else out


def init_linear_params(key, fan_in, fan_out):
    """Deterministic init mimicking torch.nn.Linear defaults (uniform)."""
    k_w, k_b = jax.random.split(key)
    bound = 1.0 / math.sqrt(fan_in)
    w = jax.random.uniform(k_w, (fan_in, fan_out), jnp.float32, -bound, bound)
    b = jax.random.uniform(k_b, (fan_out,), jnp.float32, -bound, bound)
    return w, b


if __name__ == "__main__":
    key = jax.random.PRNGKey(0)
    k_x, k_l1, k_l2 = jax.random.split(key, 3)

    batch = 32
    x = jax.random.normal(k_x, (batch, INPUT_DIM), dtype=jnp.float32)
    w1, b1 = init_linear_params(k_l1, INPUT_DIM, HIDDEN_DIM)
    w2, b2 = init_linear_params(k_l2, HIDDEN_DIM, HIDDEN_DIM)

    # One-time parameter prep (kept out of the per-call hot path).
    params = prepare_mlp_params(w1, b1, w2, b2, compute_dtype=jnp.float32)

    out = mlp_forward(x, params)
    out = jax.block_until_ready(out)
    assert out.shape == (batch, HIDDEN_DIM)
    assert out.dtype == jnp.float32

    # Reference: the PyTorch MLP forward (Linear -> ReLU) x 2 in f32.
    ref = jnp.maximum(x @ w1 + b1, 0.0)
    ref = jnp.maximum(ref @ w2 + b2, 0.0)
    assert jnp.allclose(out, ref, atol=1e-2, rtol=1e-2), \
        float(jnp.max(jnp.abs(out - ref)))

    print("KERNEL_OK")
</pallas_src>

<mosaic_0001>
module attributes {stable_mosaic.version = 11 : i64} {
  func.func @mlp_kernel(%arg0: i32, %arg1: memref<32x7xf32, #tpu.memory_space<vmem>>, %arg2: memref<7x64xf32, #tpu.memory_space<vmem>>, %arg3: memref<1x64xf32, #tpu.memory_space<vmem>>, %arg4: memref<64x64xf32, #tpu.memory_space<vmem>>, %arg5: memref<1x64xf32, #tpu.memory_space<vmem>>, %arg6: memref<32x64xf32, #tpu.memory_space<vmem>>) attributes {dimension_semantics = [#tpu.dimension_semantics<parallel>], iteration_bounds = array<i64: 1>, scalar_prefetch = 0 : i64, scratch_operands = 0 : i64, tpu.core_type = #tpu.core_type<tc>, window_params = [{transform_indices = @transform_0, window_bounds = array<i64: 32, 7>}, {pipeline_mode = #tpu.pipeline_mode<synchronous>, transform_indices = @transform_1, window_bounds = array<i64: 7, 64>}, {pipeline_mode = #tpu.pipeline_mode<synchronous>, transform_indices = @transform_2, window_bounds = array<i64: 1, 64>}, {pipeline_mode = #tpu.pipeline_mode<synchronous>, transform_indices = @transform_3, window_bounds = array<i64: 64, 64>}, {pipeline_mode = #tpu.pipeline_mode<synchronous>, transform_indices = @transform_4, window_bounds = array<i64: 1, 64>}, {transform_indices = @transform_5, window_bounds = array<i64: 32, 64>}]} {
    %c0 = arith.constant 0 : index
    %c0_0 = arith.constant 0 : index
    %0 = vector.load %arg1[%c0, %c0_0] : memref<32x7xf32, #tpu.memory_space<vmem>>, vector<32x7xf32>
    %c0_1 = arith.constant 0 : index
    %c0_2 = arith.constant 0 : index
    %1 = vector.load %arg2[%c0_1, %c0_2] : memref<7x64xf32, #tpu.memory_space<vmem>>, vector<7x64xf32>
    %cst = arith.constant dense<0.000000e+00> : vector<32x64xf32>
    %2 = tpu.matmul %0, %1, %cst {dimension_numbers = #tpu.dot_dimension_numbers<[1], [0], [0], [1], [0, 0, 1, 1], [], []>} : vector<32x7xf32>, vector<7x64xf32>, vector<32x64xf32> -> vector<32x64xf32>
    %c0_3 = arith.constant 0 : index
    %c0_4 = arith.constant 0 : index
    %3 = vector.load %arg3[%c0_3, %c0_4] : memref<1x64xf32, #tpu.memory_space<vmem>>, vector<1x64xf32>
    %4 = vector.broadcast %3 : vector<1x64xf32> to vector<32x64xf32>
    %5 = arith.addf %2, %4 : vector<32x64xf32>
    %cst_5 = arith.constant 0.000000e+00 : f32
    %6 = vector.broadcast %cst_5 : f32 to vector<32x64xf32>
    %7 = arith.maximumf %5, %6 : vector<32x64xf32>
    %c0_6 = arith.constant 0 : index
    %c0_7 = arith.constant 0 : index
    %8 = vector.load %arg4[%c0_6, %c0_7] : memref<64x64xf32, #tpu.memory_space<vmem>>, vector<64x64xf32>
    %cst_8 = arith.constant dense<0.000000e+00> : vector<32x64xf32>
    %9 = tpu.matmul %7, %8, %cst_8 {dimension_numbers = #tpu.dot_dimension_numbers<[1], [0], [0], [1], [0, 0, 1, 1], [], []>} : vector<32x64xf32>, vector<64x64xf32>, vector<32x64xf32> -> vector<32x64xf32>
    %c0_9 = arith.constant 0 : index
    %c0_10 = arith.constant 0 : index
    %10 = vector.load %arg5[%c0_9, %c0_10] : memref<1x64xf32, #tpu.memory_space<vmem>>, vector<1x64xf32>
    %11 = vector.broadcast %10 : vector<1x64xf32> to vector<32x64xf32>
    %12 = arith.addf %9, %11 : vector<32x64xf32>
    %cst_11 = arith.constant 0.000000e+00 : f32
    %13 = vector.broadcast %cst_11 : f32 to vector<32x64xf32>
    %14 = arith.maximumf %12, %13 : vector<32x64xf32>
    %c0_12 = arith.constant 0 : index
    %c0_13 = arith.constant 0 : index
    %15 = vector.load %arg6[%c0_12, %c0_13] : memref<32x64xf32, #tpu.memory_space<vmem>>, vector<32x64xf32>
    tpu.vector_store %arg6[%c0_12, %c0_13], %14 {strides = array<i32>} : memref<32x64xf32, #tpu.memory_space<vmem>>, vector<32x64xf32>,
    return
  }
  func.func @transform_0(%arg0: i32) -> (i32, i32) {
    %c0_i32 = arith.constant 0 : i32
    %c0_i32_0 = arith.constant 0 : i32
    return %arg0, %c0_i32 : i32, i32
  }
  func.func @transform_1(%arg0: i32) -> (i32, i32) {
    %c0_i32 = arith.constant 0 : i32
    %c0_i32_0 = arith.constant 0 : i32
    %c0_i32_1 = arith.constant 0 : i32
    return %c0_i32, %c0_i32_0 : i32, i32
  }
  func.func @transform_2(%arg0: i32) -> (i32, i32) {
    %c0_i32 = arith.constant 0 : i32
    %c0_i32_0 = arith.constant 0 : i32
    %c0_i32_1 = arith.constant 0 : i32
    return %c0_i32, %c0_i32_0 : i32, i32
  }
  func.func @transform_3(%arg0: i32) -> (i32, i32) {
    %c0_i32 = arith.constant 0 : i32
    %c0_i32_0 = arith.constant 0 : i32
    %c0_i32_1 = arith.constant 0 : i32
    return %c0_i32, %c0_i32_0 : i32, i32
  }
  func.func @transform_4(%arg0: i32) -> (i32, i32) {
    %c0_i32 = arith.constant 0 : i32
    %c0_i32_0 = arith.constant 0 : i32
    %c0_i32_1 = arith.constant 0 : i32
    return %c0_i32, %c0_i32_0 : i32, i32
  }
  func.func @transform_5(%arg0: i32) -> (i32, i32) {
    %c0_i32 = arith.constant 0 : i32
    %c0_i32_0 = arith.constant 0 : i32
    return %arg0, %c0_i32 : i32, i32
  }
}

</mosaic_0001>

<bundles_post_ra>
// kernel: tpu_custom_call.1
= control target key start
LH: loop header
LB: loop body
LE: loop exit
PB: predicated region body
PF: predicated region fallthrough
CT: control target
= control target key end

     0   :  { %10 = vsyncpa [#allocation3], 0  ;;  %s339_s0 = inlined_call_operand.vmem [shape: f32[32,7], index: 0, kind: input, shape index: {}]   ;;  %s340_s1 = inlined_call_operand.vmem [shape: f32[7,64], index: 1, kind: input, shape index: {}]   ;;  %s341_s2 = inlined_call_operand.vmem [shape: f32[1,64], index: 2, kind: input, shape index: {}]   ;;  %s342_s3 = inlined_call_operand.hbm [shape: f32[64,64], index: 3, kind: input, shape index: {}]   ;;  %s343_s4 = inlined_call_operand.vmem [shape: f32[1,64], index: 4, kind: input, shape index: {}]   ;;  %s344_s5 = inlined_call_operand.hbm [shape: f32[32,64], index: 5, kind: output, shape index: {}]  }
   0x1   :  { %11 = vsyncpa [#allocation4], 0  ;;  %s22_s20 = sshll.u32 %s342_s3, 4  ;;  %s260_s21 = smov [#allocation2]   ;;  %s23_s20 = int_to_ptr.hbm [resolvable:$true] %s22_s20 }
   0x2   :  { %s24_s22 = sshll.u32 %s260_s21, 4  ;;  %s261_s23 = smov 128   ;;  %s25_s22 = int_to_ptr.vmem [resolvable:$true] %s24_s22 }
   0x3   :  { %s262_s24 = smov 8  }
   0x4   :  { %30 = dma.hbm_to_vmem [thread:$0]  %s23_s20, 1024, %s25_s22, [#allocation3], %s261_s23, %s261_s23, %s262_s24  }
   0x5   :  { %256 = dma.done.wait [#allocation3], 1024  }
   0x6   :  { %257 = vsyncadd [#allocation3], 4294966272  ;;  %vm59_vm0 = vcmask 1046528   ;;  %vm46_vm1 = vcmask 56320   ;;  %v41_v0 = vld [vmem:[%s340_s1] sm:$0x7f] }
   0x7   :  { %v37_v1 = vld [vmem:[%s339_s0] sm:$0xff]  ;;  %177 = vmatpush.msk.msra.mxu0 %vm59_vm0, %v41_v0  ;;  %v103_v2 = vld [vmem:[#allocation2 + $0x38] sm:$0xff]  ;;  %v102_v3 = vld [vmem:[#allocation2 + $0x30] sm:$0xff]  ;;  %vm108_vm2 = vcmask 523264   ;;  %s263_s10 = smov [#allocation5]   ;;  %s164_s13 = sshll.u32 %s344_s5, 4  ;;  %s165_s13 = int_to_ptr.hbm [resolvable:$true] %s164_s13 }
   0x8   :  { %178 = vmatmul.msk.f32.vlgmr.msra.gmra.mxu0 %vm46_vm1, %v37_v1  ;;  %129 = vmatpush.msra.mxu1 %v103_v2  ;;  %v101_v4 = vld [vmem:[#allocation2 + $0x28] sm:$0xff]  ;;  %v100_v5 = vld [vmem:[#allocation2 + $0x20] sm:$0xff]  ;;  %v99_v7 = vld [vmem:[#allocation2 + $0x18] sm:$0xff]  ;;  %s162_s11 = sshll.u32 %s263_s10, 4  ;;  %s163_s11 = int_to_ptr.vmem [resolvable:$true] %s162_s11 }
   0x9   :  { %186 = vmatpush.msra.mxu2 %v103_v2  ;;  %187 = vmatpush.msra.mxu3 %v103_v2  ;;  %v38_v6 = vld [vmem:[%s339_s0 + $0x8] sm:$0xff]  ;;  %v39_v8 = vld [vmem:[%s339_s0 + $0x10] sm:$0xff]  ;;  %v40_v9 = vld [vmem:[%s339_s0 + $0x18] sm:$0xff] }
   0xa   :  { %130 = vmatpush.msra.mxu1 %v102_v3  ;;  %v98_v10 = vld [vmem:[#allocation2 + $0x10] sm:$0xff]  ;;  %v97_v11 = vld [vmem:[#allocation2 + $0x8] sm:$0xff]  ;;  %v96_v12 = vld [vmem:[#allocation2] sm:$0xff] }
   0xb   :  { %188 = vmatpush.msra.mxu2 %v102_v3  ;;  %189 = vmatpush.msra.mxu3 %v102_v3  ;;  %v206_v13 = vld [vmem:[%s341_s2] ss:$0 sm:$0xff] }
   0xc   :  { %131 = vmatpush.msra.mxu1 %v101_v4  ;;  %v207_v26 = vld [vmem:[%s343_s4] ss:$0 sm:$0xff] }
   0xd   :  { %190 = vmatpush.msra.mxu2 %v101_v4  ;;  %191 = vmatpush.msra.mxu3 %v101_v4 }
   0xe   :  { %132 = vmatpush.msra.mxu1 %v100_v5 }
   0xf   :  { %192 = vmatpush.msra.mxu2 %v100_v5  ;;  %193 = vmatpush.msra.mxu3 %v100_v5 }
  0x10   :  { %179 = vmatmul.msk.f32.gmra.mxu0 %vm46_vm1, %v38_v6  ;;  %133 = vmatpush.msra.mxu1 %v99_v7 }
  0x11   :  { %194 = vmatpush.msra.mxu2 %v99_v7  ;;  %195 = vmatpush.msra.mxu3 %v99_v7 }
  0x12   :  { %134 = vmatpush.msra.mxu1 %v98_v10 }
  0x13   :  { %196 = vmatpush.msra.mxu2 %v98_v10  ;;  %197 = vmatpush.msra.mxu3 %v98_v10 }
  0x14   :  { %135 = vmatpush.msra.mxu1 %v97_v11 }
  0x15   :  { %198 = vmatpush.msra.mxu2 %v97_v11  ;;  %199 = vmatpush.msra.mxu3 %v97_v11 }
  0x16   :  { %136 = vmatpush.msra.mxu1 %v96_v12 }
  0x17   :  { %200 = vmatpush.msra.mxu2 %v96_v12  ;;  %201 = vmatpush.msra.mxu3 %v96_v12 }
  0x18   :  { %180 = vmatmul.msk.f32.gmra.mxu0 %vm46_vm1, %v39_v8 }
  0x20   :  { %181 = vmatmul.msk.f32.gmra.mxu0 %vm46_vm1, %v40_v9 }
  0x85   :  { %v80_v14 = vpop.f32.mrf.mxu0 }
  0x86   :  { %v81_v15 = vadd.f32 %v206_v13, %v80_v14 }
  0x88   :  { %v92_v16 = vmax.f32 %v81_v15, 0.0 }
  0x8a   :  { %182 = vmatmul.msk.f32.vlgmr.msra.gmra.mxu1 %vm108_vm2, %v92_v16 }
  0x8d   :  { %v83_v17 = vpop.f32.mrf.mxu0 }
  0x8e   :  { %v84_v18 = vadd.f32 %v206_v13, %v83_v17 }
  0x90   :  { %v93_v19 = vmax.f32 %v84_v18, 0.0 }
  0x92   :  { %183 = vmatmul.msk.f32.vlgmr.msra.gmra.mxu2 %vm108_vm2, %v93_v19 }
  0x95   :  { %v86_v20 = vpop.f32.mrf.mxu0 }
  0x96   :  { %v87_v21 = vadd.f32 %v206_v13, %v86_v20 }
  0x98   :  { %v94_v22 = vmax.f32 %v87_v21, 0.0 }
  0x9a   :  { %184 = vmatmul.msk.f32.vlgmr.msra.gmra.mxu3 %vm108_vm2, %v94_v22 }
  0x9d   :  { %v89_v23 = vpop.f32.mrf.mxu0 }
  0x9e   :  { %v90_v24 = vadd.f32 %v206_v13, %v89_v23 }
  0xa0   :  { %v95_v25 = vmax.f32 %v90_v24, 0.0 }
  0xa2   :  { %185 = vmatmul.msk.f32.gmra.mxu3 %vm108_vm2, %v95_v25 }
 0x107   :  { %v138_v27 = vpop.f32.mrf.mxu1 }
 0x108   :  { %v139_v28 = vadd.f32 %v207_v26, %v138_v27 }
 0x10a   :  { %v150_v29 = vmax.f32 %v139_v28, 0.0 }
 0x10c   :  { %154 = vst.msk [vmem:[#allocation5] sm:$0xff] %vm108_vm2, %v150_v29 }
 0x115   :  { %v141_v30 = vpop.f32.mrf.mxu2 }
 0x116   :  { %v142_v31 = vadd.f32 %v207_v26, %v141_v30 }
 0x118   :  { %v151_v32 = vmax.f32 %v142_v31, 0.0 }
 0x11a   :  { %155 = vst.msk [vmem:[#allocation5 + $0x8] sm:$0xff] %vm108_vm2, %v151_v32 }
 0x11d   :  { %v144_v33 = vpop.f32.mrf.mxu3 }
 0x11e   :  { %v145_v34 = vadd.f32 %v207_v26, %v144_v33 }
 0x120   :  { %v152_v35 = vmax.f32 %v145_v34, 0.0 }
 0x122   :  { %156 = vst.msk [vmem:[#allocation5 + $0x10] sm:$0xff] %vm108_vm2, %v152_v35 }
 0x125   :  { %v147_v36 = vpop.f32.mrf.mxu3 }
 0x126   :  { %v148_v37 = vadd.f32 %v207_v26, %v147_v36 }
 0x128   :  { %v153_v38 = vmax.f32 %v148_v37, 0.0 }
 0x12a   :  { %157 = vst.msk [vmem:[#allocation5 + $0x18] sm:$0xff] %vm108_vm2, %v153_v38 }
 0x12b   :  { %170 = dma.vmem_to_hbm [thread:$0]  %s163_s11, 512, %s165_s13, [#allocation4], %s261_s23, %s261_s23, %s262_s24  }
 0x12c   :  { %258 = dma.done.wait [#allocation4], 512  }
 0x12d   :  { %259 = vsyncadd [#allocation4], 4294966784 }
 0x12e   :  { %175 = vsyncpa [#allocation3], 1 }
 0x12f   :  { %176 = vsyncpa [#allocation4], 1 }

</bundles_post_ra>
